<compile_context>
chip_gen: v7x
topology: tpu7x:2x2x1
jax: 0.10.0
libtpu: 0.0.40
codegen_flags: <defaults>
</compile_context>

<pallas_src>
import jax
import jax.numpy as jnp
import numpy as np
from jax.experimental import pallas as pl
from jax.experimental.pallas import tpu as pltpu


def opnet_kernel(var_ref, xw_ref, out_ref):
    """Single-invocation kernel computing the full OPNet forward.

    var_ref : (L,)        f32, SMEM -> [Var_e_0, ..., Var_e_{L-2}, Var_w]
    xw_ref  : (R, 128)    f32, VMEM -> rows 0..L-1   = x[0..L-1]   (lane-padded)
                                       rows L..2L-1  = error weights 0..L-2,
                                                       classifier weight
                                       rows 2L..R-1  = zero padding (R = ceil(2L/8)*8)
    out_ref : (8, 128)    f32, VMEM -> row 0, lanes 0..L   = errors[0..L]
                                       row 0, lane  L+1    = pred
                                       everything else zero
    """
    L = var_ref.shape[0]

    # All L per-layer dot products (each a Linear(size, 1, bias=False)) at
    # once: one full-vreg VPU multiply + one XLU lane reduction -> (L, 1).
    d = jnp.sum(xw_ref[0:L, :] * xw_ref[L:2 * L, :], axis=-1, keepdims=True)

    # Pre-extract the L rows so the sublane extracts are independent of the
    # serial `predict` chain (the kernel's only critical path).
    d_rows = [d[i:i + 1, :] for i in range(L)]

    predict = jnp.zeros((1, 1), jnp.float32)
    prev_err = jnp.zeros((1, 1), jnp.float32)
    errs = [prev_err]                                   # errors[0] = zeros(1, 1)

    # Unrolled L-step recurrence (L is small and static); only (1,1) values
    # remain on the serial dependency chain.
    for i in range(L - 1):
        predict = d_rows[i] + var_ref[i] * predict      # error_module fwd
        # torch.norm of a (1,1) tensor is just abs().
        prev_err = jnp.abs(predict - prev_err)
        errs.append(prev_err)

    # classifier_module on x[-1].
    pred = d_rows[L - 1] + var_ref[L - 1] * predict
    errs.append(jnp.abs(pred - prev_err))

    # Assemble one lane-dense full-vreg output slab and store it once
    # (single unmasked vst; no per-value masked sublane stores, one output DMA).
    lane = jax.lax.broadcasted_iota(jnp.int32, (8, 128), 1)
    sub = jax.lax.broadcasted_iota(jnp.int32, (8, 128), 0)
    out = jnp.zeros((8, 128), jnp.float32)
    vals = errs + [pred]                                # errors[0..L], then pred
    for idx, v in enumerate(vals):
        out = jnp.where((sub == 0) & (lane == idx), v, out)
    out_ref[...] = out


def pack_weights(error_weights, classifier_weight, var_e, var_w):
    """Packs the (static-across-calls) parameters once.

    error_weights     : (L-1, 1, S)
    classifier_weight : (1, S)
    var_e             : (L-1,)
    var_w             : ()
    returns (w_pad: (L, S_pad) f32, var: (L,) f32)
    """
    Lm1, _, S = error_weights.shape
    L = Lm1 + 1
    S_pad = max(128, ((S + 127) // 128) * 128)
    w2d = jnp.concatenate(
        [error_weights.reshape(L - 1, S),
         classifier_weight.reshape(1, S)], axis=0).astype(jnp.float32)
    w_pad = jnp.zeros((L, S_pad), jnp.float32).at[:, :S].set(w2d)
    var = jnp.concatenate(
        [var_e.reshape(L - 1), var_w.reshape(1)]).astype(jnp.float32)
    return w_pad, var


@jax.jit
def opnet_forward(x, w_pad, var):
    """Packs x against the cached weights and calls the gridless kernel.

    x     : (L, 1, S)     -- the L per-layer inputs
    w_pad : (L, S_pad)    -- from pack_weights
    var   : (L,)          -- from pack_weights
    returns (pred: (1, 1) f32, errors: (1, L+1) f32)
    """
    L, _, S = x.shape
    S_pad = w_pad.shape[1]
    R = ((2 * L + 7) // 8) * 8                          # round rows up to 8

    # Per-call packing lives inside the same jit as the pallas_call so XLA
    # fuses it into a single launch; S is zero-padded to a full lane tile.
    x2d = x.reshape(L, S).astype(jnp.float32)
    x_pad = jnp.zeros((L, S_pad), jnp.float32).at[:, :S].set(x2d)
    pieces = [x_pad, w_pad]
    if R > 2 * L:
        pieces.append(jnp.zeros((R - 2 * L, S_pad), jnp.float32))
    xw = jnp.concatenate(pieces, axis=0)                # (R, S_pad): one DMA

    out = pl.pallas_call(
        opnet_kernel,
        out_shape=jax.ShapeDtypeStruct((8, 128), jnp.float32),
        in_specs=[
            pl.BlockSpec(memory_space=pltpu.MemorySpace.SMEM),  # var: L scalars
            pl.BlockSpec(memory_space=pltpu.MemorySpace.VMEM),  # xw: (R, S_pad)
        ],
        out_specs=pl.BlockSpec(memory_space=pltpu.MemorySpace.VMEM),
        cost_estimate=pl.CostEstimate(
            flops=2 * L * S,
            transcendentals=0,
            bytes_accessed=4 * (R * S_pad + L + 8 * 128)),
    )(var, xw)

    pred = out[0:1, L + 1:L + 2]                        # (1, 1)
    errors = out[0:1, 0:L + 1]                          # (1, L+1)
    return pred, errors


def opnet_reference(x, error_weights, classifier_weight, var_e, var_w):
    """Pure-JAX reference matching the PyTorch forward semantics (in f32)."""
    L = x.shape[0]
    predict = jnp.zeros((1, 1), jnp.float32)
    errors = [jnp.zeros((1, 1), jnp.float32)]
    for i in range(L - 1):
        predict = x[i] @ error_weights[i].T + var_e[i] * predict      # (1, 1)
        errors.append(jnp.linalg.norm(predict - errors[-1]))
    pred = x[-1] @ classifier_weight.T + var_w * predict
    errors.append(jnp.linalg.norm(pred - errors[-1]))
    return pred, errors


if __name__ == "__main__":
    # Small shapes consistent with the module: number_layers=4, size=32.
    L, S = 4, 32
    key = jax.random.PRNGKey(0)
    kx, kw, kc = jax.random.split(key, 3)

    # Deterministic synthetic inputs / parameters (no checkpoint load).
    x = jax.random.normal(kx, (L, 1, S), dtype=jnp.float32)
    error_weights = 0.1 * jax.random.normal(kw, (L - 1, 1, S), dtype=jnp.float32)
    classifier_weight = 0.1 * jax.random.normal(kc, (1, S), dtype=jnp.float32)
    var_e = jnp.ones((L - 1,), jnp.float32)   # Var_e init: torch.ones(1, 1)
    var_w = jnp.ones((), jnp.float32)         # Var_w init: torch.ones(1, 1)

    # Weight packing is hoisted (cacheable when weights are static across calls).
    w_pad, var = pack_weights(error_weights, classifier_weight, var_e, var_w)

    pred, errs = opnet_forward(x, w_pad, var)
    pred, errs = jax.block_until_ready((pred, errs))

    ref_pred, ref_errs = opnet_reference(x, error_weights, classifier_weight,
                                         var_e, var_w)
    ref_err_vec = jnp.concatenate(
        [jnp.reshape(e, (1,)) for e in ref_errs]).reshape(1, L + 1)

    np.testing.assert_allclose(np.asarray(pred), np.asarray(ref_pred),
                               rtol=1e-5, atol=1e-5)
    np.testing.assert_allclose(np.asarray(errs), np.asarray(ref_err_vec),
                               rtol=1e-5, atol=1e-5)
    print("KERNEL_OK")
</pallas_src>

<mosaic_0001>
module attributes {stable_mosaic.version = 11 : i64} {
  func.func @opnet_kernel(%arg0: memref<4xf32, #tpu.memory_space<smem>>, %arg1: memref<8x128xf32, #tpu.memory_space<vmem>>, %arg2: memref<8x128xf32, #tpu.memory_space<vmem>>) attributes {dimension_semantics = [], scalar_prefetch = 0 : i64, scratch_operands = 0 : i64, tpu.core_type = #tpu.core_type<tc>} {
    %c0 = arith.constant 0 : index
    %c0_0 = arith.constant 0 : index
    %0 = vector.load %arg1[%c0, %c0_0] : memref<8x128xf32, #tpu.memory_space<vmem>>, vector<4x128xf32>
    %c4 = arith.constant 4 : index
    %c0_1 = arith.constant 0 : index
    %1 = vector.load %arg1[%c4, %c0_1] : memref<8x128xf32, #tpu.memory_space<vmem>>, vector<4x128xf32>
    %2 = arith.mulf %0, %1 : vector<4x128xf32>
    %cst = arith.constant dense<0.000000e+00> : vector<4xf32>
    %3 = vector.multi_reduction <add>, %2, %cst [1] : vector<4x128xf32> to vector<4xf32>
    %4 = vector.shape_cast %3 : vector<4xf32> to vector<4x1xf32>
    %5 = vector.extract_strided_slice %4 {offsets = [0, 0], sizes = [1, 1], strides = [1, 1]} : vector<4x1xf32> to vector<1x1xf32>
    %6 = vector.extract_strided_slice %4 {offsets = [1, 0], sizes = [1, 1], strides = [1, 1]} : vector<4x1xf32> to vector<1x1xf32>
    %7 = vector.extract_strided_slice %4 {offsets = [2, 0], sizes = [1, 1], strides = [1, 1]} : vector<4x1xf32> to vector<1x1xf32>
    %8 = vector.extract_strided_slice %4 {offsets = [3, 0], sizes = [1, 1], strides = [1, 1]} : vector<4x1xf32> to vector<1x1xf32>
    %cst_2 = arith.constant 0.000000e+00 : f32
    %9 = vector.broadcast %cst_2 : f32 to vector<1x1xf32>
    %cst_3 = arith.constant 0.000000e+00 : f32
    %10 = vector.broadcast %cst_3 : f32 to vector<1x1xf32>
    %c0_4 = arith.constant 0 : index
    %11 = memref.load %arg0[%c0_4] : memref<4xf32, #tpu.memory_space<smem>>
    %12 = vector.broadcast %11 : f32 to vector<1x1xf32>
    %13 = arith.mulf %12, %9 : vector<1x1xf32>
    %14 = arith.addf %5, %13 : vector<1x1xf32>
    %15 = arith.subf %14, %10 : vector<1x1xf32>
    %16 = math.absf %15 : vector<1x1xf32>
    %c1 = arith.constant 1 : index
    %17 = memref.load %arg0[%c1] : memref<4xf32, #tpu.memory_space<smem>>
    %18 = vector.broadcast %17 : f32 to vector<1x1xf32>
    %19 = arith.mulf %18, %14 : vector<1x1xf32>
    %20 = arith.addf %6, %19 : vector<1x1xf32>
    %21 = arith.subf %20, %16 : vector<1x1xf32>
    %22 = math.absf %21 : vector<1x1xf32>
    %c2 = arith.constant 2 : index
    %23 = memref.load %arg0[%c2] : memref<4xf32, #tpu.memory_space<smem>>
    %24 = vector.broadcast %23 : f32 to vector<1x1xf32>
    %25 = arith.mulf %24, %20 : vector<1x1xf32>
    %26 = arith.addf %7, %25 : vector<1x1xf32>
    %27 = arith.subf %26, %22 : vector<1x1xf32>
    %28 = math.absf %27 : vector<1x1xf32>
    %c3 = arith.constant 3 : index
    %29 = memref.load %arg0[%c3] : memref<4xf32, #tpu.memory_space<smem>>
    %30 = vector.broadcast %29 : f32 to vector<1x1xf32>
    %31 = arith.mulf %30, %26 : vector<1x1xf32>
    %32 = arith.addf %8, %31 : vector<1x1xf32>
    %33 = arith.subf %32, %28 : vector<1x1xf32>
    %34 = math.absf %33 : vector<1x1xf32>
    %35 = tpu.iota {dimensions = array<i32: 1>} : vector<8x128xi32>
    %36 = tpu.iota {dimensions = array<i32: 0>} : vector<8x128xi32>
    %cst_5 = arith.constant 0.000000e+00 : f32
    %37 = vector.broadcast %cst_5 : f32 to vector<8x128xf32>
    %c0_i32 = arith.constant 0 : i32
    %38 = vector.broadcast %c0_i32 : i32 to vector<8x128xi32>
    %39 = arith.cmpi eq, %36, %38 : vector<8x128xi32>
    %c0_i32_6 = arith.constant 0 : i32
    %40 = vector.broadcast %c0_i32_6 : i32 to vector<8x128xi32>
    %41 = arith.cmpi eq, %35, %40 : vector<8x128xi32>
    %42 = arith.andi %39, %41 : vector<8x128xi1>
    %43 = vector.shape_cast %10 : vector<1x1xf32> to vector<1x1xf32>
    %44 = vector.broadcast %43 : vector<1x1xf32> to vector<8x128xf32>
    %45 = arith.select %42, %44, %37 : vector<8x128xi1>, vector<8x128xf32>
    %c0_i32_7 = arith.constant 0 : i32
    %46 = vector.broadcast %c0_i32_7 : i32 to vector<8x128xi32>
    %47 = arith.cmpi eq, %36, %46 : vector<8x128xi32>
    %c1_i32 = arith.constant 1 : i32
    %48 = vector.broadcast %c1_i32 : i32 to vector<8x128xi32>
    %49 = arith.cmpi eq, %35, %48 : vector<8x128xi32>
    %50 = arith.andi %47, %49 : vector<8x128xi1>
    %51 = vector.shape_cast %16 : vector<1x1xf32> to vector<1x1xf32>
    %52 = vector.broadcast %51 : vector<1x1xf32> to vector<8x128xf32>
    %53 = arith.select %50, %52, %45 : vector<8x128xi1>, vector<8x128xf32>
    %c0_i32_8 = arith.constant 0 : i32
    %54 = vector.broadcast %c0_i32_8 : i32 to vector<8x128xi32>
    %55 = arith.cmpi eq, %36, %54 : vector<8x128xi32>
    %c2_i32 = arith.constant 2 : i32
    %56 = vector.broadcast %c2_i32 : i32 to vector<8x128xi32>
    %57 = arith.cmpi eq, %35, %56 : vector<8x128xi32>
    %58 = arith.andi %55, %57 : vector<8x128xi1>
    %59 = vector.shape_cast %22 : vector<1x1xf32> to vector<1x1xf32>
    %60 = vector.broadcast %59 : vector<1x1xf32> to vector<8x128xf32>
    %61 = arith.select %58, %60, %53 : vector<8x128xi1>, vector<8x128xf32>
    %c0_i32_9 = arith.constant 0 : i32
    %62 = vector.broadcast %c0_i32_9 : i32 to vector<8x128xi32>
    %63 = arith.cmpi eq, %36, %62 : vector<8x128xi32>
    %c3_i32 = arith.constant 3 : i32
    %64 = vector.broadcast %c3_i32 : i32 to vector<8x128xi32>
    %65 = arith.cmpi eq, %35, %64 : vector<8x128xi32>
    %66 = arith.andi %63, %65 : vector<8x128xi1>
    %67 = vector.shape_cast %28 : vector<1x1xf32> to vector<1x1xf32>
    %68 = vector.broadcast %67 : vector<1x1xf32> to vector<8x128xf32>
    %69 = arith.select %66, %68, %61 : vector<8x128xi1>, vector<8x128xf32>
    %c0_i32_10 = arith.constant 0 : i32
    %70 = vector.broadcast %c0_i32_10 : i32 to vector<8x128xi32>
    %71 = arith.cmpi eq, %36, %70 : vector<8x128xi32>
    %c4_i32 = arith.constant 4 : i32
    %72 = vector.broadcast %c4_i32 : i32 to vector<8x128xi32>
    %73 = arith.cmpi eq, %35, %72 : vector<8x128xi32>
    %74 = arith.andi %71, %73 : vector<8x128xi1>
    %75 = vector.shape_cast %34 : vector<1x1xf32> to vector<1x1xf32>
    %76 = vector.broadcast %75 : vector<1x1xf32> to vector<8x128xf32>
    %77 = arith.select %74, %76, %69 : vector<8x128xi1>, vector<8x128xf32>
    %c0_i32_11 = arith.constant 0 : i32
    %78 = vector.broadcast %c0_i32_11 : i32 to vector<8x128xi32>
    %79 = arith.cmpi eq, %36, %78 : vector<8x128xi32>
    %c5_i32 = arith.constant 5 : i32
    %80 = vector.broadcast %c5_i32 : i32 to vector<8x128xi32>
    %81 = arith.cmpi eq, %35, %80 : vector<8x128xi32>
    %82 = arith.andi %79, %81 : vector<8x128xi1>
    %83 = vector.shape_cast %32 : vector<1x1xf32> to vector<1x1xf32>
    %84 = vector.broadcast %83 : vector<1x1xf32> to vector<8x128xf32>
    %85 = arith.select %82, %84, %77 : vector<8x128xi1>, vector<8x128xf32>
    %c0_12 = arith.constant 0 : index
    %c0_13 = arith.constant 0 : index
    %86 = vector.load %arg2[%c0_12, %c0_13] : memref<8x128xf32, #tpu.memory_space<vmem>>, vector<8x128xf32>
    tpu.vector_store %arg2[%c0_12, %c0_13], %85 {strides = array<i32>} : memref<8x128xf32, #tpu.memory_space<vmem>>, vector<8x128xf32>,
    return
  }
}

</mosaic_0001>

<bundles_post_ra>
// kernel: opnet_forward.1
= control target key start
LH: loop header
LB: loop body
LE: loop exit
PB: predicated region body
PF: predicated region fallthrough
CT: control target
= control target key end

     0   :  { %7 = vsyncpa [#allocation3], 0  ;;  %s179_s0 = inlined_call_operand.vmem [shape: f32[4], index: 0, kind: input, shape index: {}]   ;;  %s180_s1 = inlined_call_operand.vmem [shape: f32[8,128], index: 1, kind: input, shape index: {}]   ;;  %s181_s2 = inlined_call_operand.vmem [shape: f32[8,128], index: 2, kind: output, shape index: {}]  }
   0x1   :  { %s14_s11 = sshll.u32 %s179_s0, 4  ;;  %s15_s11 = int_to_ptr.vmem [resolvable:$true] %s14_s11 }
   0x2   :  { %s132_s12 = scalar_lea.vmem %s15_s11, 16  ;;  %p137_p1 = scmp.lt.s32.totalorder %s15_s11, %s15_s11 }
   0x3   :  { %p133_p0 = scmp.ne.s32.totalorder %s15_s11, %s132_s12  ;;  %p138_p2 = scmp.lt.s32.totalorder %s132_s12, %s132_s12 }
   0x5   :  { %p139_p3 = por %p138_p2, %p137_p1 }
   0x7   :  { %p140_p4 = pnand %p139_p3, %p133_p0 }
   0x9   :  { %143 = shalt.err (!%p140_p4)
}
   0xa   :  { %s146_s13 = smov [#allocation2]  }
   0xb   :  { %17 = dma.vmem_to_smem %s15_s11, 16, %s146_s13, [#allocation3]  }
   0xc   :  { %144 = dma.done.wait [#allocation3], 16  }
   0xd   :  { %145 = vsyncadd [#allocation3], 4294967280 }
   0xe   :  { %23 = sfence }
   0xf   :  { %v24_v0 = vld [vmem:[%s180_s1] sm:$0xf]  ;;  %v25_v1 = vld [vmem:[%s180_s1 + $0x4] sm:$0xf]  ;;  %vm27_vm0 = vcmask 1043456   ;;  %s31_s0 = sld [smem:[#allocation2]]  ;;  %v72_v34 = vlaneseq }
  0x10   :  { %v26_v2 = vmul.f32 %v25_v1, %v24_v0  ;;  %s120_s18 = sld [smem:[#allocation2 + $0x1]]  ;;  %s121_s19 = sld [smem:[#allocation2 + $0x2]] }
  0x11   :  { %s122_s20 = sld [smem:[#allocation2 + $0x3]]  ;;  %v75_v35 = vshrl.u32 %v72_v34, 7  ;;  %v73_v36 = vand.u32 127, %v72_v34 }
  0x12   :  { %v28_v3 = vsel %vm27_vm0, %v26_v2, 0.0 }
  0x13   :  { %29 = vadd.xlane.f32.xlu0 %v28_v3  ;;  %v81_v37 = vsub.s32 0, %v75_v35  ;;  %vm76_vm1 = vcmp.eq.s32.totalorder %v75_v35, 0  ;;  %vm77_vm2 = vcmp.eq.s32.totalorder %v73_v36, 1  ;;  %vm84_vm3 = vcmp.eq.s32.totalorder %v73_v36, 2 }
  0x14   :  { %vm91_vm4 = vcmp.eq.s32.totalorder %v73_v36, 3  ;;  %vm78_vm5 = vmand %vm76_vm1, %vm77_vm2  ;;  %vm98_vm6 = vcmp.eq.s32.totalorder %v73_v36, 4  ;;  %vm106_vm8 = vcmp.eq.s32.totalorder %v73_v36, 5 }
  0x15   :  { %v32_v4 = vstv %s31_s0  ;;  %vm85_vm7 = vmand %vm76_vm1, %vm84_vm3 }
  0x16   :  { %v33_v5 = vmul.f32 0.0, %v32_v4  ;;  %v37_v7 = vstv %s120_s18  ;;  %v49_v12 = vstv %s121_s19  ;;  %vm92_vm9 = vmand %vm76_vm1, %vm91_vm4 }
  0x17   :  { %v61_v19 = vstv %s122_s20  ;;  %vm99_vm10 = vmand %vm76_vm1, %vm98_vm6 }
  0x18   :  { %vm107_vm11 = vmand %vm76_vm1, %vm106_vm8 }
  0xa0   :  { %v30_v6 = vpop.xlane.xlu0 %29 }
  0xa1   :  { %v34_v8 = vadd.f32 %v33_v5, %v30_v6 }
  0xa3   :  { %v35_v9 = vand.u32 2147483647, %v34_v8  ;;  %v38_v10 = vmul.f32 %v37_v7, %v34_v8 }
  0xa5   :  { %v40_v11 = vrot.slane %v38_v10, 7  ;;  %v44_v14 = vrot.slane %v35_v9, 7  ;;  %v82_v38 = vrot.slane %v35_v9, %v81_v37 }
  0xa7   :  { %v42_v13 = vadd.f32 %v40_v11, %v30_v6  ;;  %v83_v41 = vsel %vm78_vm5, %v82_v38, 0.0 }
  0xa9   :  { %v50_v15 = vmul.f32 %v49_v12, %v42_v13  ;;  %v46_v16 = vsub.f32 %v42_v13, %v44_v14 }
  0xab   :  { %v52_v17 = vrot.slane %v50_v15, 7  ;;  %v47_v18 = vand.u32 2147483647, %v46_v16 }
  0xad   :  { %v54_v20 = vadd.f32 %v52_v17, %v30_v6  ;;  %v56_v21 = vrot.slane %v47_v18, 7  ;;  %v86_v22 = vrot.slane %v47_v18, 1 }
  0xaf   :  { %v62_v23 = vmul.f32 %v61_v19, %v54_v20  ;;  %123 = vpush %v86_v22  ;;  %v58_v24 = vsub.f32 %v54_v20, %v56_v21 }
  0xb1   :  { %v64_v25 = vrot.slane %v62_v23, 7  ;;  %v59_v26 = vand.u32 2147483647, %v58_v24 }
  0xb3   :  { %v66_v27 = vadd.f32 %v64_v25, %v30_v6  ;;  %v93_v28 = vrot.slane %v59_v26, 2  ;;  %v68_v29 = vrot.slane %v59_v26, 7 }
  0xb5   :  { %125 = vpush %v93_v28  ;;  %v70_v30 = vsub.f32 %v66_v27, %v68_v29  ;;  %v109_v33 = vrot.slane %v66_v27, 3 }
  0xb7   :  { %v71_v31 = vand.u32 2147483647, %v70_v30 }
  0xb9   :  { %v101_v32 = vrot.slane %v71_v31, 3 }
  0xbb   :  { %127 = vpush %v101_v32 }
  0xbc   :  { %129 = vpush %v109_v33 }
  0xe0   :  { %s124_s1 = spop %123 }
  0xe1   :  { %v88_v39 = vstv %s124_s1 }
  0xe2   :  { %v90_v42 = vsel %vm85_vm7, %v88_v39, %v83_v41 }
  0xe6   :  { %s126_s21 = spop %125 }
  0xe7   :  { %v95_v40 = vstv %s126_s21 }
  0xe8   :  { %v97_v43 = vsel %vm92_vm9, %v95_v40, %v90_v42 }
  0xec   :  { %s128_s22 = spop %127 }
  0xed   :  { %v103_v44 = vstv %s128_s22  ;;  %s130_s23 = spop %129 }
  0xee   :  { %v105_v45 = vsel %vm99_vm10, %v103_v44, %v97_v43  ;;  %v111_v46 = vstv %s130_s23 }
  0xef   :  { %v113_v47 = vsel %vm107_vm11, %v111_v46, %v105_v45 }
  0xf0   :  { %114 = vst [vmem:[%s181_s2] sm:$0xff] %v113_v47 }
  0xf1   :  { %119 = vsyncpa [#allocation3], 1 }

</bundles_post_ra>
